<compile_context>
chip_gen: v7x
topology: tpu7x:2x2x1
jax: 0.10.0
libtpu: 0.0.40
codegen_flags: <defaults>
</compile_context>

<pallas_src>
import functools

import jax
import jax.numpy as jnp
from jax import lax
from jax.experimental import pallas as pl
from jax.experimental.pallas import tpu as pltpu


def _round_up(x, m):
    return ((x + m - 1) // m) * m


def _chamfer_kernel(a1_ref, a2_ref, av1_ref, av2_ref,
                    min_i_ref, min_j_ref, sum1_ref, sum2_ref,
                    *, n1, n2, tile_n1, tile_n2, feat):
    """Grid = (batch_block, n1_tile, n2_tile)."""
    i = pl.program_id(1)
    j = pl.program_id(2)
    ni = pl.num_programs(1)
    nj = pl.num_programs(2)

    @pl.when((i == 0) & (j == 0))
    def _():
        sum1_ref[...] = jnp.zeros_like(sum1_ref)
        sum2_ref[...] = jnp.zeros_like(sum2_ref)

    x = a1_ref[...]                      # (bb, F, tn1)  array1 points on lanes
    y = a2_ref[...]                      # (bb, F, tn2)  array2 points on lanes
    bb = x.shape[0]

    if feat <= 8:
        # Direct (x - y)^2 expansion, unrolled over the tiny feature dim.
        # Pure VPU: no MXU padding waste, no cancellation error.
        diff = x[:, 0, :, None] - y[:, 0, None, :]          # (bb, tn1, tn2)
        d = diff * diff
        for f in range(1, feat):
            diff = x[:, f, :, None] - y[:, f, None, :]
            d = d + diff * diff
    else:
        # MXU Gram fallback for larger feature dims.
        gram = jnp.einsum('bfi,bfj->bij', x, y,
                          preferred_element_type=jnp.float32)
        sq_x = jnp.sum(x * x, axis=1)                        # (bb, tn1)
        sq_y = jnp.sum(y * y, axis=1)                        # (bb, tn2)
        d = jnp.maximum(sq_x[:, :, None] + sq_y[:, None, :] - 2.0 * gram, 0.0)

    # Fused dual min: both Chamfer directions from the same resident tile.
    tile_min_i = jnp.min(d, axis=1)      # (bb, tn2)  min over array1 points
    tile_min_j = jnp.min(d, axis=2)      # (bb, tn1)  min over array2 points

    # Running min over array1 tiles, kept per n2-tile slot in VMEM scratch.
    @pl.when(i == 0)
    def _():
        min_i_ref[j] = tile_min_i

    @pl.when(i != 0)
    def _():
        min_i_ref[j] = jnp.minimum(min_i_ref[j], tile_min_i)

    # Running min over array2 tiles for the current n1 tile.
    @pl.when(j == 0)
    def _():
        min_j_ref[...] = tile_min_j

    @pl.when(j != 0)
    def _():
        min_j_ref[...] = jnp.minimum(min_j_ref[...], tile_min_j)

    # Last array1 tile: min-over-i is final for this j tile; fold into sum1.
    # Mask point-padding (inputs were edge-padded, mins are valid, but padded
    # columns must not count toward the mean).
    @pl.when(i == ni - 1)
    def _():
        col = lax.broadcasted_iota(jnp.int32, (bb, tile_n2), 1) + j * tile_n2
        valid = col < n2
        sum1_ref[...] += jnp.sum(jnp.where(valid, min_i_ref[j], 0.0),
                                 axis=-1, keepdims=True)

    # Last array2 tile: min-over-j is final for this i tile; fold into sum2.
    @pl.when(j == nj - 1)
    def _():
        row = lax.broadcasted_iota(jnp.int32, (bb, tile_n1), 1) + i * tile_n1
        valid = row < n1
        sum2_ref[...] += jnp.sum(jnp.where(valid, min_j_ref[...], 0.0),
                                 axis=-1, keepdims=True)

    # Final step for this batch block: emit per-batch averages (partials);
    # the wrapper does the final sum over batch and the 1/B scale.
    @pl.when((i == ni - 1) & (j == nj - 1))
    def _():
        av1_ref[...] = (sum1_ref[...] * jnp.float32(1.0 / n2))[None, :, :]
        av2_ref[...] = (sum2_ref[...] * jnp.float32(1.0 / n1))[None, :, :]


_TILE_CAP = 512  # point-tile cap (multiple of 128) for large clouds


def _plan(B, N1, N2, F):
    """Pick point-tile sizes, batch block size and a VMEM limit."""
    tn1 = N1 if N1 <= _TILE_CAP else _TILE_CAP
    tn2 = N2 if N2 <= _TILE_CAP else _TILE_CAP
    n1_pad = _round_up(N1, tn1)
    n2_pad = _round_up(N2, tn2)
    nj = n2_pad // tn2

    try:
        vmem_cap = int(pltpu.get_tpu_info().vmem_capacity_bytes)
    except Exception:
        vmem_cap = 64 * 1024 * 1024          # conservative (v7x-sized) default
    budget = int(vmem_cap * 0.7)

    f_pad = _round_up(max(F, 1), 8)          # F sits on sublanes -> padded to 8

    def footprint(bb):
        bbp = _round_up(bb, 8)
        dist_tile = 2 * bb * tn1 * tn2 * 4                   # d + broadcast temps
        inputs = 2 * 2 * bb * f_pad * (tn1 + tn2) * 4        # double-buffered blocks
        scratch = (nj * bbp * tn2 + bbp * tn1 + 2 * bbp * 128) * 4
        return dist_tile + inputs + scratch

    bb = max(1, min(B, 8))                    # amortize per-grid-step overhead
    while bb > 1 and footprint(bb) > budget:  # shrink for large point clouds
        bb -= 1

    vmem_limit = min(int(vmem_cap * 0.9),
                     max(32 * 1024 * 1024, int(footprint(bb) * 1.5)))
    return bb, tn1, tn2, n1_pad, n2_pad, vmem_limit


def point_loss_test(array1, array2):
    """Pallas implementation of PointLoss_test.forward.

    array1: (B, N1, F), array2: (B, N2, F) float point clouds.
    Returns (dist_all, dist1, dist2) scalars, matching the PyTorch module.
    """
    B, N1, F = array1.shape
    B2, N2, F2 = array2.shape
    assert B == B2 and F == F2

    bb, tn1, tn2, n1_pad, n2_pad, vmem_limit = _plan(B, N1, N2, F)
    b_pad = _round_up(B, bb)
    nb = b_pad // bb
    ni = n1_pad // tn1
    nj = n2_pad // tn2

    def prep(a, n_pad):
        n = a.shape[1]
        # Edge-pad (replicated real points keep mins valid); then put the
        # point axis on lanes: (B, N, F) -> (b_pad, F, n_pad).
        a = jnp.pad(a.astype(jnp.float32),
                    ((0, b_pad - B), (0, n_pad - n), (0, 0)), mode='edge')
        return jnp.transpose(a, (0, 2, 1))

    a1 = prep(array1, n1_pad)
    a2 = prep(array2, n2_pad)

    kernel = functools.partial(_chamfer_kernel, n1=N1, n2=N2,
                               tile_n1=tn1, tile_n2=tn2, feat=F)

    out_shapes = (
        jax.ShapeDtypeStruct((nb, bb, 1), jnp.float32),   # per-batch av_dist1
        jax.ShapeDtypeStruct((nb, bb, 1), jnp.float32),   # per-batch av_dist2
    )

    grid_spec = pltpu.PrefetchScalarGridSpec(
        num_scalar_prefetch=0,
        grid=(nb, ni, nj),
        in_specs=[
            pl.BlockSpec((bb, F, tn1), lambda b, i, j: (b, 0, i)),
            pl.BlockSpec((bb, F, tn2), lambda b, i, j: (b, 0, j)),
        ],
        out_specs=[
            pl.BlockSpec((1, bb, 1), lambda b, i, j: (b, 0, 0)),
            pl.BlockSpec((1, bb, 1), lambda b, i, j: (b, 0, 0)),
        ],
        scratch_shapes=[
            pltpu.VMEM((nj, bb, tn2), jnp.float32),   # running min over array1
            pltpu.VMEM((bb, tn1), jnp.float32),       # running min over array2
            pltpu.VMEM((bb, 1), jnp.float32),         # sum_j min_i
            pltpu.VMEM((bb, 1), jnp.float32),         # sum_i min_j
        ],
    )

    av1, av2 = pl.pallas_call(
        kernel,
        out_shape=out_shapes,
        grid_spec=grid_spec,
        compiler_params=pltpu.CompilerParams(
            # Batch blocks are independent (megacore-parallel on v7x);
            # the N1/N2 tile axes carry running-min state -> arbitrary.
            dimension_semantics=("parallel", "arbitrary", "arbitrary"),
            vmem_limit_bytes=vmem_limit,
        ),
    )(a1, a2)

    av1 = av1.reshape(-1)[:B]
    av2 = av2.reshape(-1)[:B]
    dist1 = jnp.sum(av1) / B
    dist2 = jnp.sum(av2) / B
    return dist1 + dist2, dist1, dist2


def _reference_chamfer(array1, array2):
    """Pure-JAX reference mirroring chamfer_distance_numpy_test."""
    B = array1.shape[0]

    def av_dist(x, y):
        # mean over y samples of min squared distance to x points
        d = jnp.sum((x[None, :, :] - y[:, None, :]) ** 2, axis=-1)  # (Ny, Nx)
        return jnp.mean(jnp.min(d, axis=1))

    dall = jnp.float32(0.0)
    d1 = jnp.float32(0.0)
    d2 = jnp.float32(0.0)
    for i in range(B):
        av1 = av_dist(array1[i], array2[i])
        av2 = av_dist(array2[i], array1[i])
        dall = dall + (av1 + av2) / B
        d1 = d1 + av1 / B
        d2 = d2 + av2 / B
    return dall, d1, d2


if __name__ == "__main__":
    key = jax.random.PRNGKey(0)
    k1, k2 = jax.random.split(key)

    B, N, F = 2, 16, 3  # small point clouds, 3-D coordinates
    array1 = jax.random.normal(k1, (B, N, F), dtype=jnp.float32)
    array2 = jax.random.normal(k2, (B, N, F), dtype=jnp.float32)

    dist_all, dist1, dist2 = point_loss_test(array1, array2)
    jax.block_until_ready((dist_all, dist1, dist2))

    r_all, r1, r2 = _reference_chamfer(array1, array2)
    assert jnp.allclose(dist_all, r_all, atol=1e-5, rtol=1e-5)
    assert jnp.allclose(dist1, r1, atol=1e-5, rtol=1e-5)
    assert jnp.allclose(dist2, r2, atol=1e-5, rtol=1e-5)

    print("KERNEL_OK")
</pallas_src>

<mosaic_0001>
module attributes {stable_mosaic.version = 11 : i64} {
  func.func @_chamfer_kernel(%arg0: i32, %arg1: i32, %arg2: i32, %arg3: memref<2x3x16xf32, #tpu.memory_space<vmem>>, %arg4: memref<2x3x16xf32, #tpu.memory_space<vmem>>, %arg5: memref<1x2x1xf32, #tpu.memory_space<vmem>>, %arg6: memref<1x2x1xf32, #tpu.memory_space<vmem>>, %arg7: memref<1x2x16xf32, #tpu.memory_space<vmem>>, %arg8: memref<2x16xf32, #tpu.memory_space<vmem>>, %arg9: memref<2x1xf32, #tpu.memory_space<vmem>>, %arg10: memref<2x1xf32, #tpu.memory_space<vmem>>) attributes {dimension_semantics = [#tpu.dimension_semantics<parallel>, #tpu.dimension_semantics<arbitrary>, #tpu.dimension_semantics<arbitrary>], iteration_bounds = array<i64: 1, 1, 1>, scalar_prefetch = 0 : i64, scratch_operands = 4 : i64, tpu.core_type = #tpu.core_type<tc>, window_params = [{transform_indices = @transform_0, window_bounds = array<i64: 2, 3, 16>}, {transform_indices = @transform_1, window_bounds = array<i64: 2, 3, 16>}, {transform_indices = @transform_2, window_bounds = array<i64: 1, 2, 1>}, {transform_indices = @transform_3, window_bounds = array<i64: 1, 2, 1>}]} {
    %c0_i32 = arith.constant 0 : i32
    %0 = arith.cmpi eq, %arg1, %c0_i32 : i32
    %c0_i32_0 = arith.constant 0 : i32
    %1 = arith.cmpi eq, %arg2, %c0_i32_0 : i32
    %2 = arith.andi %0, %1 : i1
    %3 = arith.extui %2 : i1 to i32
    %c0_i32_1 = arith.constant 0 : i32
    %4 = arith.cmpi ne, %3, %c0_i32_1 : i32
    scf.if %4 {
      %cst_23 = arith.constant 0.000000e+00 : f32
      %64 = vector.broadcast %cst_23 : f32 to vector<2x1xf32>
      %c0_24 = arith.constant 0 : index
      %c0_25 = arith.constant 0 : index
      %65 = vector.load %arg9[%c0_24, %c0_25] : memref<2x1xf32, #tpu.memory_space<vmem>>, vector<2x1xf32>
      tpu.vector_store %arg9[%c0_24, %c0_25], %64 {strides = array<i32>} : memref<2x1xf32, #tpu.memory_space<vmem>>, vector<2x1xf32>,
      %cst_26 = arith.constant 0.000000e+00 : f32
      %66 = vector.broadcast %cst_26 : f32 to vector<2x1xf32>
      %c0_27 = arith.constant 0 : index
      %c0_28 = arith.constant 0 : index
      %67 = vector.load %arg10[%c0_27, %c0_28] : memref<2x1xf32, #tpu.memory_space<vmem>>, vector<2x1xf32>
      tpu.vector_store %arg10[%c0_27, %c0_28], %66 {strides = array<i32>} : memref<2x1xf32, #tpu.memory_space<vmem>>, vector<2x1xf32>,
    } else {
    }
    %c0 = arith.constant 0 : index
    %c0_2 = arith.constant 0 : index
    %c0_3 = arith.constant 0 : index
    %5 = vector.load %arg3[%c0, %c0_2, %c0_3] : memref<2x3x16xf32, #tpu.memory_space<vmem>>, vector<2x3x16xf32>
    %c0_4 = arith.constant 0 : index
    %c0_5 = arith.constant 0 : index
    %c0_6 = arith.constant 0 : index
    %6 = vector.load %arg4[%c0_4, %c0_5, %c0_6] : memref<2x3x16xf32, #tpu.memory_space<vmem>>, vector<2x3x16xf32>
    %7 = vector.extract_strided_slice %5 {offsets = [0, 0, 0], sizes = [2, 1, 16], strides = [1, 1, 1]} : vector<2x3x16xf32> to vector<2x1x16xf32>
    %8 = vector.shape_cast %7 : vector<2x1x16xf32> to vector<2x16xf32>
    %9 = vector.shape_cast %8 : vector<2x16xf32> to vector<2x16x1xf32>
    %10 = vector.extract_strided_slice %6 {offsets = [0, 0, 0], sizes = [2, 1, 16], strides = [1, 1, 1]} : vector<2x3x16xf32> to vector<2x1x16xf32>
    %11 = vector.shape_cast %10 : vector<2x1x16xf32> to vector<2x16xf32>
    %12 = vector.shape_cast %11 : vector<2x16xf32> to vector<2x1x16xf32>
    %13 = vector.broadcast %9 : vector<2x16x1xf32> to vector<2x16x16xf32>
    %14 = vector.broadcast %12 : vector<2x1x16xf32> to vector<2x16x16xf32>
    %15 = arith.subf %13, %14 : vector<2x16x16xf32>
    %16 = arith.mulf %15, %15 : vector<2x16x16xf32>
    %17 = vector.extract_strided_slice %5 {offsets = [0, 1, 0], sizes = [2, 1, 16], strides = [1, 1, 1]} : vector<2x3x16xf32> to vector<2x1x16xf32>
    %18 = vector.shape_cast %17 : vector<2x1x16xf32> to vector<2x16xf32>
    %19 = vector.shape_cast %18 : vector<2x16xf32> to vector<2x16x1xf32>
    %20 = vector.extract_strided_slice %6 {offsets = [0, 1, 0], sizes = [2, 1, 16], strides = [1, 1, 1]} : vector<2x3x16xf32> to vector<2x1x16xf32>
    %21 = vector.shape_cast %20 : vector<2x1x16xf32> to vector<2x16xf32>
    %22 = vector.shape_cast %21 : vector<2x16xf32> to vector<2x1x16xf32>
    %23 = vector.broadcast %19 : vector<2x16x1xf32> to vector<2x16x16xf32>
    %24 = vector.broadcast %22 : vector<2x1x16xf32> to vector<2x16x16xf32>
    %25 = arith.subf %23, %24 : vector<2x16x16xf32>
    %26 = arith.mulf %25, %25 : vector<2x16x16xf32>
    %27 = arith.addf %16, %26 : vector<2x16x16xf32>
    %28 = vector.extract_strided_slice %5 {offsets = [0, 2, 0], sizes = [2, 1, 16], strides = [1, 1, 1]} : vector<2x3x16xf32> to vector<2x1x16xf32>
    %29 = vector.shape_cast %28 : vector<2x1x16xf32> to vector<2x16xf32>
    %30 = vector.shape_cast %29 : vector<2x16xf32> to vector<2x16x1xf32>
    %31 = vector.extract_strided_slice %6 {offsets = [0, 2, 0], sizes = [2, 1, 16], strides = [1, 1, 1]} : vector<2x3x16xf32> to vector<2x1x16xf32>
    %32 = vector.shape_cast %31 : vector<2x1x16xf32> to vector<2x16xf32>
    %33 = vector.shape_cast %32 : vector<2x16xf32> to vector<2x1x16xf32>
    %34 = vector.broadcast %30 : vector<2x16x1xf32> to vector<2x16x16xf32>
    %35 = vector.broadcast %33 : vector<2x1x16xf32> to vector<2x16x16xf32>
    %36 = arith.subf %34, %35 : vector<2x16x16xf32>
    %37 = arith.mulf %36, %36 : vector<2x16x16xf32>
    %38 = arith.addf %27, %37 : vector<2x16x16xf32>
    %cst = arith.constant dense<0x7F800000> : vector<2x16xf32>
    %39 = vector.multi_reduction <minimumf>, %38, %cst [1] : vector<2x16x16xf32> to vector<2x16xf32>
    %cst_7 = arith.constant dense<0x7F800000> : vector<2x16xf32>
    %40 = vector.multi_reduction <minimumf>, %38, %cst_7 [2] : vector<2x16x16xf32> to vector<2x16xf32>
    %c0_i32_8 = arith.constant 0 : i32
    %41 = arith.cmpi eq, %arg1, %c0_i32_8 : i32
    %42 = arith.extui %41 : i1 to i32
    %c0_i32_9 = arith.constant 0 : i32
    %43 = arith.cmpi ne, %42, %c0_i32_9 : i32
    scf.if %43 {
      %64 = arith.index_cast %arg2 : i32 to index
      %c0_23 = arith.constant 0 : index
      %c0_24 = arith.constant 0 : index
      %65 = vector.load %arg7[%64, %c0_23, %c0_24] : memref<1x2x16xf32, #tpu.memory_space<vmem>>, vector<1x2x16xf32>
      %66 = vector.shape_cast %65 : vector<1x2x16xf32> to vector<2x16xf32>
      %67 = vector.shape_cast %39 : vector<2x16xf32> to vector<1x2x16xf32>
      tpu.vector_store %arg7[%64, %c0_23, %c0_24], %67 {strides = array<i32>} : memref<1x2x16xf32, #tpu.memory_space<vmem>>, vector<1x2x16xf32>,
    } else {
    }
    %c0_i32_10 = arith.constant 0 : i32
    %44 = arith.cmpi ne, %arg1, %c0_i32_10 : i32
    %45 = arith.extui %44 : i1 to i32
    %c0_i32_11 = arith.constant 0 : i32
    %46 = arith.cmpi ne, %45, %c0_i32_11 : i32
    scf.if %46 {
      %64 = arith.index_cast %arg2 : i32 to index
      %c0_23 = arith.constant 0 : index
      %c0_24 = arith.constant 0 : index
      %65 = vector.load %arg7[%64, %c0_23, %c0_24] : memref<1x2x16xf32, #tpu.memory_space<vmem>>, vector<1x2x16xf32>
      %66 = vector.shape_cast %65 : vector<1x2x16xf32> to vector<2x16xf32>
      %67 = arith.minimumf %66, %39 : vector<2x16xf32>
      %68 = arith.index_cast %arg2 : i32 to index
      %c0_25 = arith.constant 0 : index
      %c0_26 = arith.constant 0 : index
      %69 = vector.load %arg7[%68, %c0_25, %c0_26] : memref<1x2x16xf32, #tpu.memory_space<vmem>>, vector<1x2x16xf32>
      %70 = vector.shape_cast %69 : vector<1x2x16xf32> to vector<2x16xf32>
      %71 = vector.shape_cast %67 : vector<2x16xf32> to vector<1x2x16xf32>
      tpu.vector_store %arg7[%68, %c0_25, %c0_26], %71 {strides = array<i32>} : memref<1x2x16xf32, #tpu.memory_space<vmem>>, vector<1x2x16xf32>,
    } else {
    }
    %c0_i32_12 = arith.constant 0 : i32
    %47 = arith.cmpi eq, %arg2, %c0_i32_12 : i32
    %48 = arith.extui %47 : i1 to i32
    %c0_i32_13 = arith.constant 0 : i32
    %49 = arith.cmpi ne, %48, %c0_i32_13 : i32
    scf.if %49 {
      %c0_23 = arith.constant 0 : index
      %c0_24 = arith.constant 0 : index
      %64 = vector.load %arg8[%c0_23, %c0_24] : memref<2x16xf32, #tpu.memory_space<vmem>>, vector<2x16xf32>
      tpu.vector_store %arg8[%c0_23, %c0_24], %40 {strides = array<i32>} : memref<2x16xf32, #tpu.memory_space<vmem>>, vector<2x16xf32>,
    } else {
    }
    %c0_i32_14 = arith.constant 0 : i32
    %50 = arith.cmpi ne, %arg2, %c0_i32_14 : i32
    %51 = arith.extui %50 : i1 to i32
    %c0_i32_15 = arith.constant 0 : i32
    %52 = arith.cmpi ne, %51, %c0_i32_15 : i32
    scf.if %52 {
      %c0_23 = arith.constant 0 : index
      %c0_24 = arith.constant 0 : index
      %64 = vector.load %arg8[%c0_23, %c0_24] : memref<2x16xf32, #tpu.memory_space<vmem>>, vector<2x16xf32>
      %65 = arith.minimumf %64, %40 : vector<2x16xf32>
      %c0_25 = arith.constant 0 : index
      %c0_26 = arith.constant 0 : index
      %66 = vector.load %arg8[%c0_25, %c0_26] : memref<2x16xf32, #tpu.memory_space<vmem>>, vector<2x16xf32>
      tpu.vector_store %arg8[%c0_25, %c0_26], %65 {strides = array<i32>} : memref<2x16xf32, #tpu.memory_space<vmem>>, vector<2x16xf32>,
    } else {
    }
    %c0_i32_16 = arith.constant 0 : i32
    %53 = arith.cmpi eq, %arg1, %c0_i32_16 : i32
    %54 = arith.extui %53 : i1 to i32
    %c0_i32_17 = arith.constant 0 : i32
    %55 = arith.cmpi ne, %54, %c0_i32_17 : i32
    scf.if %55 {
      %64 = tpu.iota {dimensions = array<i32: 1>} : vector<2x16xi32>
      %c16_i32 = arith.constant 16 : i32
      %65 = arith.muli %arg2, %c16_i32 : i32
      %66 = vector.broadcast %65 : i32 to vector<2x16xi32>
      %67 = arith.addi %64, %66 : vector<2x16xi32>
      %c16_i32_23 = arith.constant 16 : i32
      %68 = vector.broadcast %c16_i32_23 : i32 to vector<2x16xi32>
      %69 = arith.cmpi slt, %67, %68 : vector<2x16xi32>
      %c0_24 = arith.constant 0 : index
      %c0_25 = arith.constant 0 : index
      %70 = vector.load %arg9[%c0_24, %c0_25] : memref<2x1xf32, #tpu.memory_space<vmem>>, vector<2x1xf32>
      %71 = arith.index_cast %arg2 : i32 to index
      %c0_26 = arith.constant 0 : index
      %c0_27 = arith.constant 0 : index
      %72 = vector.load %arg7[%71, %c0_26, %c0_27] : memref<1x2x16xf32, #tpu.memory_space<vmem>>, vector<1x2x16xf32>
      %73 = vector.shape_cast %72 : vector<1x2x16xf32> to vector<2x16xf32>
      %cst_28 = arith.constant 0.000000e+00 : f32
      %74 = vector.broadcast %cst_28 : f32 to vector<2x16xf32>
      %75 = arith.select %69, %73, %74 : vector<2x16xi1>, vector<2x16xf32>
      %cst_29 = arith.constant dense<0.000000e+00> : vector<2xf32>
      %76 = vector.multi_reduction <add>, %75, %cst_29 [1] : vector<2x16xf32> to vector<2xf32>
      %77 = vector.shape_cast %76 : vector<2xf32> to vector<2x1xf32>
      %78 = arith.addf %70, %77 : vector<2x1xf32>
      %c0_30 = arith.constant 0 : index
      %c0_31 = arith.constant 0 : index
      %79 = vector.load %arg9[%c0_30, %c0_31] : memref<2x1xf32, #tpu.memory_space<vmem>>, vector<2x1xf32>
      tpu.vector_store %arg9[%c0_30, %c0_31], %78 {strides = array<i32>} : memref<2x1xf32, #tpu.memory_space<vmem>>, vector<2x1xf32>,
    } else {
    }
    %c0_i32_18 = arith.constant 0 : i32
    %56 = arith.cmpi eq, %arg2, %c0_i32_18 : i32
    %57 = arith.extui %56 : i1 to i32
    %c0_i32_19 = arith.constant 0 : i32
    %58 = arith.cmpi ne, %57, %c0_i32_19 : i32
    scf.if %58 {
      %64 = tpu.iota {dimensions = array<i32: 1>} : vector<2x16xi32>
      %c16_i32 = arith.constant 16 : i32
      %65 = arith.muli %arg1, %c16_i32 : i32
      %66 = vector.broadcast %65 : i32 to vector<2x16xi32>
      %67 = arith.addi %64, %66 : vector<2x16xi32>
      %c16_i32_23 = arith.constant 16 : i32
      %68 = vector.broadcast %c16_i32_23 : i32 to vector<2x16xi32>
      %69 = arith.cmpi slt, %67, %68 : vector<2x16xi32>
      %c0_24 = arith.constant 0 : index
      %c0_25 = arith.constant 0 : index
      %70 = vector.load %arg10[%c0_24, %c0_25] : memref<2x1xf32, #tpu.memory_space<vmem>>, vector<2x1xf32>
      %c0_26 = arith.constant 0 : index
      %c0_27 = arith.constant 0 : index
      %71 = vector.load %arg8[%c0_26, %c0_27] : memref<2x16xf32, #tpu.memory_space<vmem>>, vector<2x16xf32>
      %cst_28 = arith.constant 0.000000e+00 : f32
      %72 = vector.broadcast %cst_28 : f32 to vector<2x16xf32>
      %73 = arith.select %69, %71, %72 : vector<2x16xi1>, vector<2x16xf32>
      %cst_29 = arith.constant dense<0.000000e+00> : vector<2xf32>
      %74 = vector.multi_reduction <add>, %73, %cst_29 [1] : vector<2x16xf32> to vector<2xf32>
      %75 = vector.shape_cast %74 : vector<2xf32> to vector<2x1xf32>
      %76 = arith.addf %70, %75 : vector<2x1xf32>
      %c0_30 = arith.constant 0 : index
      %c0_31 = arith.constant 0 : index
      %77 = vector.load %arg10[%c0_30, %c0_31] : memref<2x1xf32, #tpu.memory_space<vmem>>, vector<2x1xf32>
      tpu.vector_store %arg10[%c0_30, %c0_31], %76 {strides = array<i32>} : memref<2x1xf32, #tpu.memory_space<vmem>>, vector<2x1xf32>,
    } else {
    }
    %c0_i32_20 = arith.constant 0 : i32
    %59 = arith.cmpi eq, %arg1, %c0_i32_20 : i32
    %c0_i32_21 = arith.constant 0 : i32
    %60 = arith.cmpi eq, %arg2, %c0_i32_21 : i32
    %61 = arith.andi %59, %60 : i1
    %62 = arith.extui %61 : i1 to i32
    %c0_i32_22 = arith.constant 0 : i32
    %63 = arith.cmpi ne, %62, %c0_i32_22 : i32
    scf.if %63 {
      %c0_23 = arith.constant 0 : index
      %c0_24 = arith.constant 0 : index
      %64 = vector.load %arg9[%c0_23, %c0_24] : memref<2x1xf32, #tpu.memory_space<vmem>>, vector<2x1xf32>
      %cst_25 = arith.constant 6.250000e-02 : f32
      %65 = vector.broadcast %cst_25 : f32 to vector<2x1xf32>
      %66 = arith.mulf %64, %65 : vector<2x1xf32>
      %67 = vector.shape_cast %66 : vector<2x1xf32> to vector<1x2x1xf32>
      %c0_26 = arith.constant 0 : index
      %c0_27 = arith.constant 0 : index
      %c0_28 = arith.constant 0 : index
      %68 = vector.load %arg5[%c0_26, %c0_27, %c0_28] : memref<1x2x1xf32, #tpu.memory_space<vmem>>, vector<1x2x1xf32>
      tpu.vector_store %arg5[%c0_26, %c0_27, %c0_28], %67 {strides = array<i32>} : memref<1x2x1xf32, #tpu.memory_space<vmem>>, vector<1x2x1xf32>,
      %c0_29 = arith.constant 0 : index
      %c0_30 = arith.constant 0 : index
      %69 = vector.load %arg10[%c0_29, %c0_30] : memref<2x1xf32, #tpu.memory_space<vmem>>, vector<2x1xf32>
      %cst_31 = arith.constant 6.250000e-02 : f32
      %70 = vector.broadcast %cst_31 : f32 to vector<2x1xf32>
      %71 = arith.mulf %69, %70 : vector<2x1xf32>
      %72 = vector.shape_cast %71 : vector<2x1xf32> to vector<1x2x1xf32>
      %c0_32 = arith.constant 0 : index
      %c0_33 = arith.constant 0 : index
      %c0_34 = arith.constant 0 : index
      %73 = vector.load %arg6[%c0_32, %c0_33, %c0_34] : memref<1x2x1xf32, #tpu.memory_space<vmem>>, vector<1x2x1xf32>
      tpu.vector_store %arg6[%c0_32, %c0_33, %c0_34], %72 {strides = array<i32>} : memref<1x2x1xf32, #tpu.memory_space<vmem>>, vector<1x2x1xf32>,
    } else {
    }
    return
  }
  func.func @transform_0(%arg0: i32, %arg1: i32, %arg2: i32) -> (i32, i32, i32) {
    %c0_i32 = arith.constant 0 : i32
    %c0_i32_0 = arith.constant 0 : i32
    return %arg0, %c0_i32, %arg1 : i32, i32, i32
  }
  func.func @transform_1(%arg0: i32, %arg1: i32, %arg2: i32) -> (i32, i32, i32) {
    %c0_i32 = arith.constant 0 : i32
    %c0_i32_0 = arith.constant 0 : i32
    return %arg0, %c0_i32, %arg2 : i32, i32, i32
  }
  func.func @transform_2(%arg0: i32, %arg1: i32, %arg2: i32) -> (i32, i32, i32) {
    %c0_i32 = arith.constant 0 : i32
    %c0_i32_0 = arith.constant 0 : i32
    %c0_i32_1 = arith.constant 0 : i32
    return %arg0, %c0_i32, %c0_i32_0 : i32, i32, i32
  }
  func.func @transform_3(%arg0: i32, %arg1: i32, %arg2: i32) -> (i32, i32, i32) {
    %c0_i32 = arith.constant 0 : i32
    %c0_i32_0 = arith.constant 0 : i32
    %c0_i32_1 = arith.constant 0 : i32
    return %arg0, %c0_i32, %c0_i32_0 : i32, i32, i32
  }
}

</mosaic_0001>

<bundles_post_ra>
// kernel: tpu_custom_call.1
= control target key start
LH: loop header
LB: loop body
LE: loop exit
PB: predicated region body
PF: predicated region fallthrough
CT: control target
= control target key end

     0   :  { %v26_v0 = vlaneseq  ;;  %vm148_vm0 = vcmask 130048   ;;  %vm180_vm1 = vcmask 1041409   ;;  %vm185_vm2 = vcmask 123904   ;;  %s397_s0 = inlined_call_operand.vmem [shape: f32[2,3,16], index: 0, kind: input, shape index: {}]   ;;  %s398_s1 = inlined_call_operand.vmem [shape: f32[2,3,16], index: 1, kind: input, shape index: {}]   ;;  %s399_s2 = inlined_call_operand.vmem [shape: f32[1,2,1], index: 2, kind: output, shape index: {0}]   ;;  %s400_s3 = inlined_call_operand.vmem [shape: f32[1,2,1], index: 3, kind: output, shape index: {1}]  }
   0x1   :  { %v23_v2 = vld [vmem:[%s397_s0 + $0x4] sm:$0x7]  ;;  %v22_v3 = vld [vmem:[%s397_s0] sm:$0x7]  ;;  %vm19_vm4 = vcmask 1024   ;;  %vm220_vm5 = vcmask 130112  }
   0x2   :  { %v353_v1 = vshrl.u32 %v26_v0, 7  ;;  %v24_v13 = vld [vmem:[%s398_s1] sm:$0x7]  ;;  %v25_v17 = vld [vmem:[%s398_s1 + $0x4] sm:$0x7] }
   0x4   :  { %v28_v4 = vsub.s32 0, %v353_v1  ;;  %v66_v7 = vsub.s32 1, %v353_v1  ;;  %v108_v10 = vsub.s32 2, %v353_v1 }
   0x6   :  { %v40_v5 = vrot.slane %v23_v2, %v28_v4  ;;  %v29_v6 = vrot.slane %v22_v3, %v28_v4  ;;  %v67_v8 = vrot.slane %v22_v3, %v66_v7  ;;  %v78_v9 = vrot.slane %v23_v2, %v66_v7 }
   0x7   :  { %v109_v11 = vrot.slane %v22_v3, %v108_v10  ;;  %v120_v12 = vrot.slane %v23_v2, %v108_v10  ;;  %v51_v16 = vrot.slane %v24_v13, %v28_v4  ;;  %v89_v20 = vrot.slane %v24_v13, %v66_v7 }
   0x8   :  { %42 = vbcast.lane.b32.xlu1 %v40_v5, 256  ;;  %31 = vbcast.lane.b32.xlu0 %v29_v6, 256  ;;  %v55_v21 = vrot.slane %v25_v17, %v28_v4  ;;  %v93_v28 = vrot.slane %v25_v17, %v66_v7  ;;  %v131_v37 = vrot.slane %v24_v13, %v108_v10 }
   0x9   :  { %v135_v48 = vrot.slane %v25_v17, %v108_v10 }
   0xc   :  { %46 = vbcast.lane.b32.xlu1 %v40_v5, 264  ;;  %35 = vbcast.lane.b32.xlu0 %v29_v6, 264 }
  0x10   :  { %73 = vbcast.lane.b32.xlu1 %v67_v8, 264  ;;  %69 = vbcast.lane.b32.xlu0 %v67_v8, 256 }
  0x14   :  { %84 = vbcast.lane.b32.xlu1 %v78_v9, 264  ;;  %80 = vbcast.lane.b32.xlu0 %v78_v9, 256 }
  0x18   :  { %115 = vbcast.lane.b32.xlu1 %v109_v11, 264  ;;  %111 = vbcast.lane.b32.xlu0 %v109_v11, 256 }
  0x1c   :  { %126 = vbcast.lane.b32.xlu1 %v120_v12, 264  ;;  %122 = vbcast.lane.b32.xlu0 %v120_v12, 256 }
  0x7a   :  { %v43_v14 = vpop.permute.xlu1 %42  ;;  %v32_v15 = vpop.permute.xlu0 %31 }
  0x7b   :  { %v56_v22 = vsub.f32 %v32_v15, %v51_v16  ;;  %v58_v29 = vsub.f32 %v43_v14, %v55_v21 }
  0x7d   :  { %v60_v30 = vmul.f32 %v56_v22, %v56_v22  ;;  %v62_v42 = vmul.f32 %v58_v29, %v58_v29  ;;  %v210_v22 = vand.u32 127, %v26_v0 }
  0x7e   :  { %v47_v18 = vpop.permute.xlu1 %46  ;;  %v36_v19 = vpop.permute.xlu0 %35 }
  0x7f   :  { %v57_v23 = vsub.f32 %v36_v19, %v51_v16  ;;  %v59_v31 = vsub.f32 %v47_v18, %v55_v21  ;;  %vm281_vm3 = vcmp.lt.s32.totalorder %v210_v22, 16 }
  0x81   :  { %v61_v32 = vmul.f32 %v57_v23, %v57_v23  ;;  %v63_v43 = vmul.f32 %v59_v31, %v59_v31 }
  0x82   :  { %v74_v24 = vpop.permute.xlu1 %73  ;;  %v70_v25 = vpop.permute.xlu0 %69 }
  0x83   :  { %v95_v26 = vsub.f32 %v74_v24, %v89_v20  ;;  %v94_v27 = vsub.f32 %v70_v25, %v89_v20 }
  0x85   :  { %v99_v33 = vmul.f32 %v95_v26, %v95_v26  ;;  %v98_v34 = vmul.f32 %v94_v27, %v94_v27  ;;  %v331_v26 = vmov 0.0   ;;  %v215_v27 = vadd.s32 4294967288, %v210_v22 }
  0x86   :  { %v85_v35 = vpop.permute.xlu1 %84  ;;  %v81_v36 = vpop.permute.xlu0 %80  ;;  %20 = vst.msk [vmem:[#allocation4] sm:$0x3] %vm19_vm4, %v331_v26  ;;  %21 = vst.msk [vmem:[#allocation5] sm:$0x3] %vm19_vm4, %v331_v26 }
  0x87   :  { %v103_v38 = vadd.f32 %v99_v33, %v61_v32  ;;  %v102_v39 = vadd.f32 %v98_v34, %v60_v30  ;;  %v97_v40 = vsub.f32 %v85_v35, %v93_v28  ;;  %v96_v41 = vsub.f32 %v81_v36, %v93_v28 }
  0x88   :  { %v218_v29 = vsub.s32 %v215_v27, %v353_v1  ;;  %v213_v30 = vsub.s32 %v210_v22, %v353_v1 }
  0x89   :  { %v101_v44 = vmul.f32 %v97_v40, %v97_v40  ;;  %v100_v45 = vmul.f32 %v96_v41, %v96_v41 }
  0x8a   :  { %v116_v46 = vpop.permute.xlu1 %115  ;;  %v112_v47 = vpop.permute.xlu0 %111 }
  0x8b   :  { %v105_v49 = vadd.f32 %v101_v44, %v63_v43  ;;  %v104_v50 = vadd.f32 %v100_v45, %v62_v42  ;;  %v137_v51 = vsub.f32 %v116_v46, %v131_v37  ;;  %v136_v52 = vsub.f32 %v112_v47, %v131_v37 }
  0x8d   :  { %v141_v53 = vmul.f32 %v137_v51, %v137_v51  ;;  %v140_v54 = vmul.f32 %v136_v52, %v136_v52  ;;  %v282_v1 = vld [vmem:[#allocation4] sm:$0x3]  ;;  %v303_v47 = vld [vmem:[#allocation5] sm:$0x3] }
  0x8e   :  { %v127_v55 = vpop.permute.xlu1 %126  ;;  %v123_v56 = vpop.permute.xlu0 %122 }
  0x8f   :  { %v139_v57 = vsub.f32 %v127_v55, %v135_v48  ;;  %v138_v58 = vsub.f32 %v123_v56, %v135_v48  ;;  %v145_v59 = vadd.f32 %v141_v53, %v103_v38  ;;  %v144_v60 = vadd.f32 %v140_v54, %v102_v39 }
  0x91   :  { %v143_v61 = vmul.f32 %v139_v57, %v139_v57  ;;  %v142_v62 = vmul.f32 %v138_v58, %v138_v58  ;;  %v150_v63 = vsel %vm148_vm0, %v145_v59, inf  ;;  %v149_v2 = vsel %vm148_vm0, %v144_v60, inf }
  0x92   :  { %169 = vmin.xlane.f32.xlu1 %v150_v63  ;;  %167 = vmin.xlane.f32.xlu0 %v149_v2  ;;  %v151_v3 = vmin.f32 %v149_v2, %v150_v63 }
  0x93   :  { %v146_v4 = vadd.f32 %v142_v62, %v104_v50  ;;  %v147_v5 = vadd.f32 %v143_v61, %v105_v49 }
  0x94   :  { %v152_v6 = vrot.slane %v151_v3, 4 }
  0x95   :  { %v158_v7 = vsel %vm148_vm0, %v146_v4, inf  ;;  %v159_v8 = vsel %vm148_vm0, %v147_v5, inf }
  0x96   :  { %v153_v9 = vmin.f32 %v151_v3, %v152_v6  ;;  %171 = vmin.xlane.f32.xlu0 %v158_v7  ;;  %v160_v10 = vmin.f32 %v158_v7, %v159_v8 }
  0x98   :  { %v154_v11 = vrot.slane %v153_v9, 2  ;;  %v161_v12 = vrot.slane %v160_v10, 4 }
  0x9a   :  { %v155_v13 = vmin.f32 %v153_v9, %v154_v11  ;;  %173 = vmin.xlane.f32.xlu0 %v159_v8  ;;  %v162_v14 = vmin.f32 %v160_v10, %v161_v12 }
  0x9c   :  { %v163_v15 = vrot.slane %v162_v14, 2  ;;  %v156_v16 = vrot.slane %v155_v13, 1 }
  0x9e   :  { %v164_v17 = vmin.f32 %v162_v14, %v163_v15  ;;  %v157_v19 = vmin.f32 %v155_v13, %v156_v16 }
  0xa0   :  { %v165_v18 = vrot.slane %v164_v17, 1 }
  0xa2   :  { %v166_v20 = vmin.f32 %v164_v17, %v165_v18 }
  0xa4   :  { %v181_v21 = vsel %vm180_vm1, %v166_v20, %v157_v19 }
  0xa5   :  { %186 = vst.msk [vmem:[#allocation2] sm:$0x3] %vm185_vm2, %v181_v21 }
  0xac   :  { %v285_v23 = vld [vmem:[#allocation2] sm:$0x3] }
  0xad   :  { %v286_v24 = vsel %vm281_vm3, %v285_v23, 0.0 }
  0xae   :  { %v288_v25 = vsel %vm185_vm2, %v286_v24, 0.0 }
  0xaf   :  { %289 = vadd.xlane.f32.xlu1 %v288_v25 }
 0x11f   :  { %v168_v28 = vpop.xlane.xlu0 %167  ;;  %v170_v0 = vpop.xlane.xlu1 %169 }
 0x120   :  { %v219_v32 = vrot.slane %v170_v0, %v218_v29  ;;  %v214_v33 = vrot.slane %v168_v28, %v213_v30 }
 0x122   :  { %v221_v37 = vsel %vm220_vm5, %v219_v32, %v214_v33 }
 0x123   :  { %v172_v31 = vpop.xlane.xlu0 %171 }
 0x124   :  { %v225_v35 = vrot.slane %v172_v31, %v213_v30 }
 0x127   :  { %v174_v34 = vpop.xlane.xlu0 %173 }
 0x128   :  { %v229_v36 = vrot.slane %v174_v34, %v218_v29 }
 0x12a   :  { %v230_v38 = vsel %vm220_vm5, %v229_v36, %v225_v35 }
 0x12b   :  { %v232_v39 = vsel %vm180_vm1, %v230_v38, %v221_v37 }
 0x12c   :  { %235 = vst.msk [vmem:[#allocation3] sm:$0x3] %vm185_vm2, %v232_v39 }
 0x133   :  { %v304_v40 = vld [vmem:[#allocation3] sm:$0x3] }
 0x134   :  { %v305_v41 = vsel %vm281_vm3, %v304_v40, 0.0 }
 0x135   :  { %v307_v42 = vsel %vm185_vm2, %v305_v41, 0.0 }
 0x136   :  { %308 = vadd.xlane.f32.xlu0 %v307_v42 }
 0x13c   :  { %v290_v43 = vpop.xlane.xlu1 %289 }
 0x13d   :  { %v291_v44 = vadd.f32 %v290_v43, %v282_v1 }
 0x13f   :  { %293 = vst.msk [vmem:[#allocation4] sm:$0x3] %vm19_vm4, %v291_v44 }
 0x146   :  { %v315_v45 = vld [vmem:[#allocation4] sm:$0x3] }
 0x147   :  { %v316_v46 = vmul.f32 0.0625, %v315_v45 }
 0x149   :  { %318 = vst.msk [vmem:[%s399_s2] sm:$0x3] %vm19_vm4, %v316_v46 }
 0x1c3   :  { %v309_v48 = vpop.xlane.xlu0 %308 }
 0x1c4   :  { %v310_v49 = vadd.f32 %v309_v48, %v303_v47 }
 0x1c6   :  { %312 = vst.msk [vmem:[#allocation5] sm:$0x3] %vm19_vm4, %v310_v49 }
 0x1cd   :  { %v319_v50 = vld [vmem:[#allocation5] sm:$0x3] }
 0x1ce   :  { %v320_v51 = vmul.f32 0.0625, %v319_v50 }
 0x1d0   :  { %321 = vst.msk [vmem:[%s400_s3] sm:$0x3] %vm19_vm4, %v320_v51 }

</bundles_post_ra>
